<compile_context>
chip_gen: v5e
topology: v5e:2x2
jax: 0.10.0
libtpu: 0.0.40
codegen_flags: <defaults>
</compile_context>

<pallas_src>
import math
from functools import partial

import jax
import jax.numpy as jnp
from jax.experimental import pallas as pl
from jax.experimental.pallas import tpu as pltpu


# ----------------------------------------------------------------------------
# Pallas kernels (elementwise, memory-bound)
# ----------------------------------------------------------------------------
def _droppath_kernel(scale_ref, x_ref, o_ref):
    # out = scale_b * x          (standalone DropPath)
    o_ref[...] = scale_ref[...] * x_ref[...]


def _residual_droppath_kernel(scale_ref, res_ref, y_ref, o_ref):
    # out = res + scale_b * y    (residual + DropPath fused, one HBM pass)
    o_ref[...] = res_ref[...] + scale_ref[...] * y_ref[...]


def _blend_residual_droppath_kernel(scale_ref, a_ref, b_ref, y_ref, o_ref, *, wa, wb):
    # out = wa*a + wb*b + scale_b * y   (0.6/0.4 blend + residual + DropPath)
    o_ref[...] = wa * a_ref[...] + wb * b_ref[...] + scale_ref[...] * y_ref[...]


# ----------------------------------------------------------------------------
# Tiling + launcher
# ----------------------------------------------------------------------------
def _pick_row_tile(B: int) -> int:
    if B % 8 != 0:
        return B                       # full batch dim is always a legal block dim
    for tb in (64, 32, 16, 8):
        if B % tb == 0:
            return tb
    return B


def _pick_col_tile(F: int) -> int:
    for tf in (2048, 1024, 512, 256, 128):   # lane-dense multiples of 128
        if F % tf == 0:
            return tf
    return F                           # fallback: full feature dim


def _run_droppath_kernel(kernel_fn, scale, arrays, *, alias_input=None):
    """Launch a per-sample-scaled elementwise kernel over (B, F)-retiled tensors.

    arrays : list of same-shape (B, *dims) tensors, passed to the kernel in order.
    scale  : (B,) per-sample multiplier applied to the *last* tensor in `arrays`.
    alias_input : operand index (0 == scale) whose HBM buffer the output reuses.
    """
    orig_shape = arrays[0].shape
    dtype = arrays[0].dtype
    B = orig_shape[0]
    F = int(math.prod(orig_shape[1:]))

    flats = [a.reshape(B, F) for a in arrays]
    scale2 = scale.reshape(B, 1).astype(dtype)

    TB = _pick_row_tile(B)
    TF = _pick_col_tile(F)
    grid = (B // TB, F // TF)

    data_spec = pl.BlockSpec((TB, TF), lambda i, j: (i, j))
    scale_spec = pl.BlockSpec((TB, 1), lambda i, j: (i, 0))

    extra = {}
    if alias_input is not None:
        extra["input_output_aliases"] = {alias_input: 0}

    out = pl.pallas_call(
        kernel_fn,
        out_shape=jax.ShapeDtypeStruct((B, F), dtype),
        grid=grid,
        in_specs=[scale_spec] + [data_spec] * len(flats),
        out_specs=data_spec,
        compiler_params=pltpu.CompilerParams(
            dimension_semantics=("parallel", "parallel"),
            vmem_limit_bytes=32 * 1024 * 1024,
        ),
        **extra,
    )(scale2, *flats)
    return out.reshape(orig_shape)


# ----------------------------------------------------------------------------
# DropPath public API
# ----------------------------------------------------------------------------
def droppath_scale(key, batch, drop_prob, training, dtype):
    """Per-sample DropPath multiplier: 0 or 1/keep_prob (ones when inactive)."""
    if (not training) or drop_prob == 0.0:
        return jnp.ones((batch,), dtype)
    keep_prob = 1.0 - drop_prob
    u = jax.random.uniform(key, (batch,), dtype=jnp.float32)
    keep = jnp.floor(keep_prob + u)          # Bernoulli(keep_prob), as in torch
    return (keep / keep_prob).astype(dtype)


def drop_path(x, drop_prob: float = 0.0, training: bool = False, *, key=None):
    """Standalone DropPath (Pallas-backed), matching the torch function."""
    if drop_prob == 0.0 or not training:
        return x
    assert key is not None, "need a PRNG key when training with drop_prob > 0"
    scale = droppath_scale(key, x.shape[0], drop_prob, True, x.dtype)
    return _run_droppath_kernel(_droppath_kernel, scale, [x])


def fused_residual_droppath(res, branch, scale):
    """res + scale_b * branch in one pass; donates `branch`'s buffer."""
    return _run_droppath_kernel(
        _residual_droppath_kernel, scale, [res, branch], alias_input=2)


def fused_blend_residual_droppath(a, b, branch, scale, *, wa, wb):
    """wa*a + wb*b + scale_b*branch in one pass; donates `branch`'s buffer."""
    kern = partial(_blend_residual_droppath_kernel, wa=float(wa), wb=float(wb))
    return _run_droppath_kernel(kern, scale, [a, b, branch], alias_input=3)


class DropPath:
    """Drop paths (Stochastic Depth) per sample -- Pallas-backed forward."""

    def __init__(self, drop_prob=None):
        self.drop_prob = drop_prob if drop_prob is not None else 0.0
        self.training = True

    def __call__(self, x, *, key=None):
        return drop_path(x, self.drop_prob, self.training, key=key)


# ----------------------------------------------------------------------------
# Plain-JAX glue: LayerNorm / Attention (with DropKey) / MLP  (XLA handles these)
# ----------------------------------------------------------------------------
def layer_norm(x, weight, bias, eps=1e-5):
    mu = jnp.mean(x, axis=-1, keepdims=True)
    var = jnp.mean(jnp.square(x - mu), axis=-1, keepdims=True)
    return (x - mu) * jax.lax.rsqrt(var + eps) * weight + bias


def attention_forward(p, x, *, num_heads, qk_scale, attn_drop_p, proj_drop_p,
                      training, rng, attn_mask=None):
    B, N, C = x.shape
    head_dim = C // num_heads
    scale = qk_scale if qk_scale is not None else head_dim ** (-0.5)

    qkv = x @ p["qkv_w"]
    if p["qkv_b"] is not None:
        qkv = qkv + p["qkv_b"]
    qkv = jnp.transpose(qkv.reshape(B, N, 3, num_heads, head_dim), (2, 0, 3, 1, 4))
    q, k, v = qkv[0], qkv[1], qkv[2]

    attn = jnp.einsum("bhnd,bhmd->bhnm", q, k) * scale

    # DropKey: attn += bernoulli(p) * -1e12 (training only; no-op at p == 0)
    if training and attn_drop_p > 0.0:
        k_dropkey, rng = jax.random.split(rng)
        dropped = jax.random.bernoulli(k_dropkey, attn_drop_p, attn.shape)
        attn = attn + dropped.astype(attn.dtype) * (-1e12)

    attn = jax.nn.softmax(attn, axis=-1)
    if attn_mask is not None:
        # torch: attn[:, :, attn_mask == 0.0] = 0.0 (for a 2-D (N, N) mask)
        attn = jnp.where(attn_mask == 0.0, 0.0, attn)

    out = jnp.einsum("bhnm,bhmd->bhnd", attn, v)
    out = jnp.transpose(out, (0, 2, 1, 3)).reshape(B, N, C)
    out = out @ p["proj_w"] + p["proj_b"]
    if training and proj_drop_p > 0.0:
        k_drop, rng = jax.random.split(rng)
        keep = 1.0 - proj_drop_p
        out = out * jax.random.bernoulli(k_drop, keep, out.shape).astype(out.dtype) / keep
    return out, attn


def mlp_forward(p, x, *, drop_p, training, rng):
    h = x @ p["fc1_w"] + p["fc1_b"]
    h = jax.nn.gelu(h, approximate=False)        # torch nn.GELU default = exact erf
    if training and drop_p > 0.0:
        k1, k2 = jax.random.split(rng)
        keep = 1.0 - drop_p
        h = h * jax.random.bernoulli(k1, keep, h.shape).astype(h.dtype) / keep
        h = h @ p["fc2_w"] + p["fc2_b"]
        h = h * jax.random.bernoulli(k2, keep, h.shape).astype(h.dtype) / keep
        return h
    return h @ p["fc2_w"] + p["fc2_b"]


def init_blockv4_params(key, dim, num_heads, mlp_ratio=4.0, qkv_bias=False):
    hidden = int(dim * mlp_ratio)
    ks = jax.random.split(key, 4)

    def dense(k, fan_in, fan_out):
        return (0.02 * jax.random.normal(k, (fan_in, fan_out))).astype(jnp.float32)

    return {
        "norm1_w": jnp.ones((dim,), jnp.float32),
        "norm1_b": jnp.zeros((dim,), jnp.float32),
        "norm2_w": jnp.ones((dim,), jnp.float32),
        "norm2_b": jnp.zeros((dim,), jnp.float32),
        "qkv_w": dense(ks[0], dim, 3 * dim),
        "qkv_b": jnp.zeros((3 * dim,), jnp.float32) if qkv_bias else None,
        "proj_w": dense(ks[1], dim, dim),
        "proj_b": jnp.zeros((dim,), jnp.float32),
        "fc1_w": dense(ks[2], dim, hidden),
        "fc1_b": jnp.zeros((hidden,), jnp.float32),
        "fc2_w": dense(ks[3], hidden, dim),
        "fc2_b": jnp.zeros((dim,), jnp.float32),
    }


# ----------------------------------------------------------------------------
# BlockV4 forward (DropPath + residuals go through the fused Pallas kernels)
# ----------------------------------------------------------------------------
def block_v4_forward(params, x, enlist, num, *, num_heads, qk_scale=None,
                     drop=0.0, attn_drop=0.0, drop_path_prob=0.0,
                     training=True, rng=None, return_attention=False,
                     attn_mask=None, use_pallas=True):
    if rng is None:
        rng = jax.random.PRNGKey(0)
    k_attn, k_mlp, k_dp1, k_dp2 = jax.random.split(rng, 4)
    B = x.shape[0]

    y, attn = attention_forward(
        params, layer_norm(x, params["norm1_w"], params["norm1_b"]),
        num_heads=num_heads, qk_scale=qk_scale, attn_drop_p=attn_drop,
        proj_drop_p=drop, training=training, rng=k_attn, attn_mask=attn_mask)

    num = 7 - num
    enl = enlist[num]

    # x = (0.6 * enlist[7-num] + 0.4 * x) + drop_path(y)   -- fused, 1 HBM pass
    scale1 = droppath_scale(k_dp1, B, drop_path_prob, training, x.dtype)
    if use_pallas:
        x = fused_blend_residual_droppath(enl, x, y, scale1, wa=0.6, wb=0.4)
    else:
        x = 0.6 * enl + 0.4 * x + scale1[:, None, None] * y

    # x = x + drop_path(mlp(norm2(x)))                     -- fused, 1 HBM pass
    m = mlp_forward(params, layer_norm(x, params["norm2_w"], params["norm2_b"]),
                    drop_p=drop, training=training, rng=k_mlp)
    scale2 = droppath_scale(k_dp2, B, drop_path_prob, training, x.dtype)
    if use_pallas:
        x = fused_residual_droppath(x, m, scale2)
    else:
        x = x + scale2[:, None, None] * m

    if return_attention:
        return x, attn
    return x


class BlockV4:
    """JAX/Pallas port of the PyTorch BlockV4 (forward pass only)."""

    def __init__(self, dim, num_heads, mlp_ratio=4.0, qkv_bias=False, qk_scale=None,
                 drop=0.0, attn_drop=0.0, drop_path=0.0, *, param_key):
        self.num_heads = num_heads
        self.qk_scale = qk_scale
        self.drop = drop
        self.attn_drop = attn_drop
        self.drop_path_prob = drop_path
        self.training = True
        self.params = init_blockv4_params(param_key, dim, num_heads, mlp_ratio, qkv_bias)

    def __call__(self, x, enlist, num, *, rng, return_attention=False,
                 attn_mask=None, use_pallas=True):
        return block_v4_forward(
            self.params, x, enlist, num,
            num_heads=self.num_heads, qk_scale=self.qk_scale,
            drop=self.drop, attn_drop=self.attn_drop,
            drop_path_prob=self.drop_path_prob,
            training=self.training, rng=rng,
            return_attention=return_attention, attn_mask=attn_mask,
            use_pallas=use_pallas)


# ----------------------------------------------------------------------------
# Demo / correctness check
# ----------------------------------------------------------------------------
if __name__ == "__main__":
    root = jax.random.PRNGKey(0)
    k_params, k_x, k_enl, k_rng, k_dp, k_y = jax.random.split(root, 6)

    # Small ViT-block shapes: batch=2, seq=8, dim=32, heads=4 (mlp hidden=128).
    B, N, dim, heads = 2, 8, 32, 4
    drop_path_prob = 0.25

    block = BlockV4(dim, heads, mlp_ratio=4.0, qkv_bias=False,
                    drop=0.0, attn_drop=0.0, drop_path=drop_path_prob,
                    param_key=k_params)
    block.training = True

    x = jax.random.normal(k_x, (B, N, dim), dtype=jnp.float32)
    enlist = jax.random.normal(k_enl, (8, B, N, dim), dtype=jnp.float32)
    num = 3                                   # forward uses enlist[7 - num]

    # --- training forward (fused Pallas residual + DropPath kernels) ---
    out = jax.block_until_ready(block(x, enlist, num, rng=k_rng))

    # pure-JAX reference with the identical RNG stream
    ref = block(x, enlist, num, rng=k_rng, use_pallas=False)
    assert out.shape == x.shape and out.dtype == x.dtype
    assert jnp.allclose(out, ref, rtol=1e-5, atol=1e-5), float(jnp.max(jnp.abs(out - ref)))

    # --- eval forward (drop_path identity; kernels apply scale == 1) ---
    block.training = False
    out_eval = jax.block_until_ready(block(x, enlist, num, rng=k_rng))
    ref_eval = block(x, enlist, num, rng=k_rng, use_pallas=False)
    assert jnp.allclose(out_eval, ref_eval, rtol=1e-5, atol=1e-5)

    # --- standalone DropPath kernel vs. the torch-style formula ---
    y4 = jax.random.normal(k_y, (B, 4, 16, 16), dtype=jnp.float32)   # NCHW-like branch
    dp = DropPath(drop_path_prob)
    dp.training = True
    out_dp = jax.block_until_ready(dp(y4, key=k_dp))
    keep_prob = 1.0 - drop_path_prob
    u = jax.random.uniform(k_dp, (B,), dtype=jnp.float32)
    mask = jnp.floor(keep_prob + u).reshape(B, 1, 1, 1)
    ref_dp = (y4 / keep_prob) * mask          # torch: x.div(keep_prob) * random_tensor
    assert jnp.allclose(out_dp, ref_dp, rtol=1e-5, atol=1e-6)
    dp.training = False
    assert jnp.array_equal(dp(y4), y4)

    print("KERNEL_OK")
</pallas_src>

<mosaic_0001>
module attributes {stable_mosaic.version = 11 : i64} {
  func.func @_blend_residual_droppath_kernel(%arg0: i32, %arg1: i32, %arg2: memref<2x1xf32, #tpu.memory_space<vmem>>, %arg3: memref<2x256xf32, #tpu.memory_space<vmem>>, %arg4: memref<2x256xf32, #tpu.memory_space<vmem>>, %arg5: memref<2x256xf32, #tpu.memory_space<vmem>>, %arg6: memref<2x256xf32, #tpu.memory_space<vmem>>) attributes {dimension_semantics = [#tpu.dimension_semantics<parallel>, #tpu.dimension_semantics<parallel>], iteration_bounds = array<i64: 1, 1>, scalar_prefetch = 0 : i64, scratch_operands = 0 : i64, tpu.core_type = #tpu.core_type<tc>, window_params = [{transform_indices = @transform_0, window_bounds = array<i64: 2, 1>}, {transform_indices = @transform_1, window_bounds = array<i64: 2, 256>}, {transform_indices = @transform_2, window_bounds = array<i64: 2, 256>}, {transform_indices = @transform_3, window_bounds = array<i64: 2, 256>}, {transform_indices = @transform_4, window_bounds = array<i64: 2, 256>}]} {
    %c0 = arith.constant 0 : index
    %c0_0 = arith.constant 0 : index
    %0 = vector.load %arg3[%c0, %c0_0] : memref<2x256xf32, #tpu.memory_space<vmem>>, vector<2x256xf32>
    %cst = arith.constant 6.000000e-01 : f32
    %1 = vector.broadcast %cst : f32 to vector<2x256xf32>
    %2 = arith.mulf %1, %0 : vector<2x256xf32>
    %c0_1 = arith.constant 0 : index
    %c0_2 = arith.constant 0 : index
    %3 = vector.load %arg4[%c0_1, %c0_2] : memref<2x256xf32, #tpu.memory_space<vmem>>, vector<2x256xf32>
    %cst_3 = arith.constant 4.000000e-01 : f32
    %4 = vector.broadcast %cst_3 : f32 to vector<2x256xf32>
    %5 = arith.mulf %4, %3 : vector<2x256xf32>
    %6 = arith.addf %2, %5 : vector<2x256xf32>
    %c0_4 = arith.constant 0 : index
    %c0_5 = arith.constant 0 : index
    %7 = vector.load %arg2[%c0_4, %c0_5] : memref<2x1xf32, #tpu.memory_space<vmem>>, vector<2x1xf32>
    %c0_6 = arith.constant 0 : index
    %c0_7 = arith.constant 0 : index
    %8 = vector.load %arg5[%c0_6, %c0_7] : memref<2x256xf32, #tpu.memory_space<vmem>>, vector<2x256xf32>
    %9 = vector.broadcast %7 : vector<2x1xf32> to vector<2x256xf32>
    %10 = arith.mulf %9, %8 : vector<2x256xf32>
    %11 = arith.addf %6, %10 : vector<2x256xf32>
    %c0_8 = arith.constant 0 : index
    %c0_9 = arith.constant 0 : index
    %12 = vector.load %arg6[%c0_8, %c0_9] : memref<2x256xf32, #tpu.memory_space<vmem>>, vector<2x256xf32>
    tpu.vector_store %arg6[%c0_8, %c0_9], %11 {strides = array<i32>} : memref<2x256xf32, #tpu.memory_space<vmem>>, vector<2x256xf32>,
    return
  }
  func.func @transform_0(%arg0: i32, %arg1: i32) -> (i32, i32) {
    %c0_i32 = arith.constant 0 : i32
    %c0_i32_0 = arith.constant 0 : i32
    return %arg0, %c0_i32 : i32, i32
  }
  func.func @transform_1(%arg0: i32, %arg1: i32) -> (i32, i32) {
    %c0_i32 = arith.constant 0 : i32
    return %arg0, %arg1 : i32, i32
  }
  func.func @transform_2(%arg0: i32, %arg1: i32) -> (i32, i32) {
    %c0_i32 = arith.constant 0 : i32
    return %arg0, %arg1 : i32, i32
  }
  func.func @transform_3(%arg0: i32, %arg1: i32) -> (i32, i32) {
    %c0_i32 = arith.constant 0 : i32
    return %arg0, %arg1 : i32, i32
  }
  func.func @transform_4(%arg0: i32, %arg1: i32) -> (i32, i32) {
    %c0_i32 = arith.constant 0 : i32
    return %arg0, %arg1 : i32, i32
  }
}

</mosaic_0001>

<bundles_post_ra>
// kernel: tpu_custom_call.1
= control target key start
LH: loop header
LB: loop body
LE: loop exit
PB: predicated region body
PF: predicated region fallthrough
CT: control target
= control target key end

     0   :  { %9 = vsyncpa [#allocation3], 0  ;;  %s176_s0 = inlined_call_operand.vmem [shape: f32[2,1], index: 0, kind: input, shape index: {}]   ;;  %s177_s1 = inlined_call_operand.vmem [shape: f32[2,256], index: 1, kind: input, shape index: {}]   ;;  %s178_s2 = inlined_call_operand.vmem [shape: f32[2,256], index: 2, kind: input, shape index: {}]   ;;  %s179_s3 = inlined_call_operand.hbm [shape: f32[2,256], index: 3, kind: input, shape index: {}, may-alias: {3,4}]   ;;  %s180_s4 = inlined_call_operand.hbm [shape: f32[2,256], index: 4, kind: output, shape index: {}, may-alias: {3,4}]  }
   0x1   :  { %10 = vsyncpa [#allocation4], 0  ;;  %s22_s17 = sshll.u32 %s179_s3, 4  ;;  %s133_s18 = smov [#allocation2]   ;;  %s23_s17 = int_to_ptr.hbm [resolvable:$true] %s22_s17 }
   0x2   :  { %s24_s19 = sshll.u32 %s133_s18, 4  ;;  %s25_s19 = int_to_ptr.vmem [resolvable:$true] %s24_s19 }
   0x3   :  { %27 = dma.hbm_to_vmem [thread:$0]  %s23_s17, 64, %s25_s19, [#allocation3]  }
   0x4   :  { %129 = dma.done.wait [#allocation3], 64  }
   0x5   :  { %130 = vsyncadd [#allocation3], 4294967232  ;;  %v134_v0 = vmov 0   ;;  %v38_v1 = vld [vmem:[#allocation2] sm:$0xf]  ;;  %vm55_vm0 = vcmask 1041408  }
   0x6   :  { %80 = vset.pattern.permute.xlu0 %v134_v0  ;;  %v37_v2 = vld [vmem:[%s176_s0] sm:$0x3]  ;;  %45 = vst [vmem:[#allocation1] ss:$4 sm:$0xff] %v38_v1  ;;  %s135_s0 = smov [#allocation5]  }
   0x7   :  { %41 = vperm.xlu0 %80, %v37_v2   ;;  %v32_v3 = vld [vmem:[%s177_s1] sm:$0xf]  ;;  %s65_s25 = sshll.u32 %s135_s0, 4  ;;  %s67_s1 = sshll.u32 %s180_s4, 4  ;;  %s66_s25 = int_to_ptr.vmem [resolvable:$true] %s65_s25  ;;  %s68_s1 = int_to_ptr.hbm [resolvable:$true] %s67_s1 }
   0x8   :  { %v34_v4 = vld [vmem:[%s178_s2] sm:$0xf]  ;;  %v33_v6 = vmul.f32 0.6, %v32_v3 }
   0x9   :  { %v35_v7 = vmul.f32 0.4, %v34_v4 }
   0xb   :  { %v36_v11 = vadd.f32 %v35_v7, %v33_v6 }
   0xd   :  { %v47_v5 = vld.sshfl [vmem:[#allocation1 + $0x8] sm:$0xff pattern:$0x73625140]  ;;  %v46_v8 = vld.sshfl [vmem:[#allocation1] sm:$0xff pattern:$0x73625140] }
  0x79   :  { %v42_v9 = vpop.permute.xlu0 %41 }
  0x7a   :  { %v51_v10 = vmul.f32 %v47_v5, %v42_v9  ;;  %v50_v12 = vmul.f32 %v46_v8, %v42_v9 }
  0x7c   :  { %v54_v13 = vrot.slane %v51_v10, 6 }
  0x7e   :  { %v56_v14 = vsel %vm55_vm0, %v50_v12, %v54_v13 }
  0x7f   :  { %v58_v15 = vadd.f32 %v56_v14, %v36_v11 }
  0x81   :  { %59 = vst [vmem:[#allocation5] sm:$0xf] %v58_v15 }
  0x82   :  { %70 = dma.vmem_to_hbm [thread:$0]  %s66_s25, 64, %s68_s1, [#allocation4]  }
  0x83   :  { %131 = dma.done.wait [#allocation4], 64  }
  0x84   :  { %132 = vsyncadd [#allocation4], 4294967232 }
  0x85   :  { %75 = vsyncpa [#allocation3], 1 }
  0x86   :  { %76 = vsyncpa [#allocation4], 1 }

</bundles_post_ra>
